<compile_context>
chip_gen: v6e
topology: v6e:2x2x1
jax: 0.10.0
libtpu: 0.0.40
codegen_flags: <defaults>
</compile_context>

<pallas_src>
import functools

import numpy as np
import jax
import jax.numpy as jnp
from jax.experimental import pallas as pl
from jax.experimental.pallas import tpu as pltpu


def rnn_kernel(x_ref, wih0_ref, whh0_ref, b0_ref,
               wih1_ref, whh1_ref, b1_ref,
               wfc_ref, bfc_ref, out_ref,
               h0_ref, h1_ref):
    """One time chunk of the 2-layer RNN recurrence + deferred FC + tanh.

    x_ref:   (Tt*B, D_in)  time-major-flattened input chunk (row = t*B + b)
    out_ref: (Tt*B, O)     time-major-flattened output chunk
    h0_ref/h1_ref: (B, H)  VMEM scratch carrying hidden state across chunks.
    """
    B, H = h0_ref.shape
    Tt = x_ref.shape[0] // B

    # Zero-init hidden state at the first time chunk (h0 = None in PyTorch).
    @pl.when(pl.program_id(0) == 0)
    def _():
        h0_ref[...] = jnp.zeros_like(h0_ref)
        h1_ref[...] = jnp.zeros_like(h1_ref)

    # Hoisted, time-independent layer-0 input projection for the whole chunk:
    # one (Tt*B, D_in) @ (D_in, H) matmul off the serial chain; b0 folded in.
    xp = jnp.dot(x_ref[...], wih0_ref[...],
                 preferred_element_type=jnp.float32) + b0_ref[...]    # (Tt*B, H)

    whh0 = whh0_ref[...]
    wih1 = wih1_ref[...]
    whh1 = whh1_ref[...]
    b1 = jnp.broadcast_to(b1_ref[...], (B, H))          # hoisted broadcast

    h0 = h0_ref[...]
    h1 = h1_ref[...]
    hs = []
    # Static (fully unrolled) recurrence; unroll is bounded by the time chunk.
    # Only h@W_hh0, h@W_ih1, g@W_hh1 + two tanhs are on the serial chain.
    for t in range(Tt):
        xp_t = xp[t * B:(t + 1) * B, :]                  # (B, H), static slice
        h0 = jnp.tanh(xp_t
                      + jnp.dot(h0, whh0, preferred_element_type=jnp.float32))
        h1 = jnp.tanh(jnp.dot(h0, wih1, preferred_element_type=jnp.float32)
                      + jnp.dot(h1, whh1, preferred_element_type=jnp.float32)
                      + b1)
        hs.append(h1)

    # Carry hidden state to the next time chunk.
    h0_ref[...] = h0
    h1_ref[...] = h1

    # Deferred FC + tanh over the whole chunk: one matmul, one store.
    hs_all = jnp.concatenate(hs, axis=0)                 # (Tt*B, H)
    out_ref[...] = jnp.tanh(
        jnp.dot(hs_all, wfc_ref[...], preferred_element_type=jnp.float32)
        + bfc_ref[...])


@functools.partial(jax.jit, static_argnames=("time_chunk",))
def rnn_forward(x, wih0, whh0, b0, wih1, whh1, b1, wfc, bfc, *, time_chunk=8):
    """x: (B, T, D_in) batch_first (as in the PyTorch module). Returns (B, T, O)."""
    B, T, D = x.shape
    H = whh0.shape[0]
    O = wfc.shape[1]

    # Chunk must divide T and keep the flattened chunk sublane-aligned;
    # otherwise fall back to a single full-sequence chunk.
    tt = time_chunk if (T % time_chunk == 0 and (time_chunk * B) % 8 == 0) else T

    # Single fused relayout to time-major-flattened rows (row = t*B + b) so
    # every per-step slice inside the kernel is a static contiguous block.
    x_tm = jnp.transpose(x.astype(jnp.float32), (1, 0, 2)).reshape(T * B, D)

    out_tm = pl.pallas_call(
        rnn_kernel,
        out_shape=jax.ShapeDtypeStruct((T * B, O), jnp.float32),
        grid_spec=pltpu.PrefetchScalarGridSpec(
            num_scalar_prefetch=0,
            grid=(T // tt,),
            in_specs=[
                pl.BlockSpec((tt * B, D), lambda i: (i, 0)),   # x chunk
                pl.BlockSpec((D, H), lambda i: (0, 0)),        # W_ih0 (in,out)
                pl.BlockSpec((H, H), lambda i: (0, 0)),        # W_hh0
                pl.BlockSpec((1, H), lambda i: (0, 0)),        # b_ih0 + b_hh0
                pl.BlockSpec((H, H), lambda i: (0, 0)),        # W_ih1
                pl.BlockSpec((H, H), lambda i: (0, 0)),        # W_hh1
                pl.BlockSpec((1, H), lambda i: (0, 0)),        # b_ih1 + b_hh1
                pl.BlockSpec((H, O), lambda i: (0, 0)),        # W_fc
                pl.BlockSpec((1, O), lambda i: (0, 0)),        # b_fc
            ],
            out_specs=pl.BlockSpec((tt * B, O), lambda i: (i, 0)),
            scratch_shapes=[
                pltpu.VMEM((B, H), jnp.float32),   # layer-0 hidden carry
                pltpu.VMEM((B, H), jnp.float32),   # layer-1 hidden carry
            ],
        ),
        compiler_params=pltpu.CompilerParams(
            # Time chunks are sequential (hidden-state carry across the grid).
            dimension_semantics=("arbitrary",),
            # Explicit budget, safe on v5e/v6e (128 MiB) and v7x (64 MiB).
            vmem_limit_bytes=32 * 1024 * 1024,
        ),
    )(x_tm, wih0, whh0, b0, wih1, whh1, b1, wfc, bfc)

    # Back to batch_first; single XLA relayout, trivial at these sizes.
    return jnp.transpose(out_tm.reshape(T, B, O), (1, 0, 2))


def make_params(key, num_inputs, num_neurons, num_outputs):
    """Deterministic PyTorch-style init: U(-1/sqrt(H), 1/sqrt(H))."""
    k = 1.0 / np.sqrt(num_neurons)
    keys = jax.random.split(key, 10)
    u = lambda kk, shape: jax.random.uniform(kk, shape, jnp.float32, -k, k)
    # PyTorch stores weight_ih_l0 as (H, D); we keep the (in, out) transposed form.
    wih0 = u(keys[0], (num_inputs, num_neurons))
    whh0 = u(keys[1], (num_neurons, num_neurons))
    b0 = (u(keys[2], (num_neurons,)) + u(keys[3], (num_neurons,))).reshape(1, -1)
    wih1 = u(keys[4], (num_neurons, num_neurons))
    whh1 = u(keys[5], (num_neurons, num_neurons))
    b1 = (u(keys[6], (num_neurons,)) + u(keys[7], (num_neurons,))).reshape(1, -1)
    wfc = u(keys[8], (num_neurons, num_outputs))
    bfc = u(keys[9], (num_outputs,)).reshape(1, -1)
    return wih0, whh0, b0, wih1, whh1, b1, wfc, bfc


def reference_forward(x, wih0, whh0, b0, wih1, whh1, b1, wfc, bfc):
    """Pure-JAX reference of the same forward pass."""
    B, T, _ = x.shape
    H = whh0.shape[0]
    h0 = jnp.zeros((B, H), jnp.float32)
    h1 = jnp.zeros((B, H), jnp.float32)
    outs = []
    for t in range(T):
        x_t = x[:, t, :]
        h0 = jnp.tanh(x_t @ wih0 + h0 @ whh0 + b0)
        h1 = jnp.tanh(h0 @ wih1 + h1 @ whh1 + b1)
        outs.append(jnp.tanh(h1 @ wfc + bfc))
    return jnp.stack(outs, axis=1)


if __name__ == "__main__":
    NUM_INPUTS, NUM_NEURONS, NUM_OUTPUTS = 290, 29, 11
    B = 2

    key = jax.random.PRNGKey(0)
    kx, kp = jax.random.split(key)
    params = make_params(kp, NUM_INPUTS, NUM_NEURONS, NUM_OUTPUTS)

    # T=8: single time chunk (grid of 1). T=16: two chunks, exercising the
    # cross-chunk hidden-state carry in VMEM scratch.
    for T in (8, 16):
        x = jax.random.normal(jax.random.fold_in(kx, T),
                              (B, T, NUM_INPUTS), jnp.float32)
        out = jax.block_until_ready(rnn_forward(x, *params))
        ref = reference_forward(x, *params)
        assert out.shape == (B, T, NUM_OUTPUTS), out.shape
        np.testing.assert_allclose(np.asarray(out), np.asarray(ref),
                                   atol=1e-3, rtol=1e-3)
    print("KERNEL_OK")
</pallas_src>

<mosaic_0001>
module attributes {stable_mosaic.version = 11 : i64} {
  func.func @rnn_kernel(%arg0: i32, %arg1: memref<16x290xf32, #tpu.memory_space<vmem>>, %arg2: memref<290x29xf32, #tpu.memory_space<vmem>>, %arg3: memref<29x29xf32, #tpu.memory_space<vmem>>, %arg4: memref<1x29xf32, #tpu.memory_space<vmem>>, %arg5: memref<29x29xf32, #tpu.memory_space<vmem>>, %arg6: memref<29x29xf32, #tpu.memory_space<vmem>>, %arg7: memref<1x29xf32, #tpu.memory_space<vmem>>, %arg8: memref<29x11xf32, #tpu.memory_space<vmem>>, %arg9: memref<1x11xf32, #tpu.memory_space<vmem>>, %arg10: memref<16x11xf32, #tpu.memory_space<vmem>>, %arg11: memref<2x29xf32, #tpu.memory_space<vmem>>, %arg12: memref<2x29xf32, #tpu.memory_space<vmem>>) attributes {dimension_semantics = [#tpu.dimension_semantics<arbitrary>], iteration_bounds = array<i64: 1>, scalar_prefetch = 0 : i64, scratch_operands = 2 : i64, tpu.core_type = #tpu.core_type<tc>, window_params = [{transform_indices = @transform_0, window_bounds = array<i64: 16, 290>}, {pipeline_mode = #tpu.pipeline_mode<synchronous>, transform_indices = @transform_1, window_bounds = array<i64: 290, 29>}, {pipeline_mode = #tpu.pipeline_mode<synchronous>, transform_indices = @transform_2, window_bounds = array<i64: 29, 29>}, {pipeline_mode = #tpu.pipeline_mode<synchronous>, transform_indices = @transform_3, window_bounds = array<i64: 1, 29>}, {pipeline_mode = #tpu.pipeline_mode<synchronous>, transform_indices = @transform_4, window_bounds = array<i64: 29, 29>}, {pipeline_mode = #tpu.pipeline_mode<synchronous>, transform_indices = @transform_5, window_bounds = array<i64: 29, 29>}, {pipeline_mode = #tpu.pipeline_mode<synchronous>, transform_indices = @transform_6, window_bounds = array<i64: 1, 29>}, {pipeline_mode = #tpu.pipeline_mode<synchronous>, transform_indices = @transform_7, window_bounds = array<i64: 29, 11>}, {pipeline_mode = #tpu.pipeline_mode<synchronous>, transform_indices = @transform_8, window_bounds = array<i64: 1, 11>}, {transform_indices = @transform_9, window_bounds = array<i64: 16, 11>}]} {
    %c0_i32 = arith.constant 0 : i32
    %0 = arith.cmpi eq, %arg0, %c0_i32 : i32
    %1 = arith.extui %0 : i1 to i32
    %c0_i32_0 = arith.constant 0 : i32
    %2 = arith.cmpi ne, %1, %c0_i32_0 : i32
    scf.if %2 {
      %cst_53 = arith.constant 0.000000e+00 : f32
      %99 = vector.broadcast %cst_53 : f32 to vector<2x29xf32>
      %c0_54 = arith.constant 0 : index
      %c0_55 = arith.constant 0 : index
      %100 = vector.load %arg11[%c0_54, %c0_55] : memref<2x29xf32, #tpu.memory_space<vmem>>, vector<2x29xf32>
      tpu.vector_store %arg11[%c0_54, %c0_55], %99 {strides = array<i32>} : memref<2x29xf32, #tpu.memory_space<vmem>>, vector<2x29xf32>,
      %cst_56 = arith.constant 0.000000e+00 : f32
      %101 = vector.broadcast %cst_56 : f32 to vector<2x29xf32>
      %c0_57 = arith.constant 0 : index
      %c0_58 = arith.constant 0 : index
      %102 = vector.load %arg12[%c0_57, %c0_58] : memref<2x29xf32, #tpu.memory_space<vmem>>, vector<2x29xf32>
      tpu.vector_store %arg12[%c0_57, %c0_58], %101 {strides = array<i32>} : memref<2x29xf32, #tpu.memory_space<vmem>>, vector<2x29xf32>,
    } else {
    }
    %c0 = arith.constant 0 : index
    %c0_1 = arith.constant 0 : index
    %3 = vector.load %arg1[%c0, %c0_1] : memref<16x290xf32, #tpu.memory_space<vmem>>, vector<16x290xf32>
    %c0_2 = arith.constant 0 : index
    %c0_3 = arith.constant 0 : index
    %4 = vector.load %arg2[%c0_2, %c0_3] : memref<290x29xf32, #tpu.memory_space<vmem>>, vector<290x29xf32>
    %cst = arith.constant dense<0.000000e+00> : vector<16x29xf32>
    %5 = tpu.matmul %3, %4, %cst {dimension_numbers = #tpu.dot_dimension_numbers<[1], [0], [0], [1], [0, 0, 1, 1], [], []>} : vector<16x290xf32>, vector<290x29xf32>, vector<16x29xf32> -> vector<16x29xf32>
    %c0_4 = arith.constant 0 : index
    %c0_5 = arith.constant 0 : index
    %6 = vector.load %arg4[%c0_4, %c0_5] : memref<1x29xf32, #tpu.memory_space<vmem>>, vector<1x29xf32>
    %7 = vector.broadcast %6 : vector<1x29xf32> to vector<16x29xf32>
    %8 = arith.addf %5, %7 : vector<16x29xf32>
    %c0_6 = arith.constant 0 : index
    %c0_7 = arith.constant 0 : index
    %9 = vector.load %arg3[%c0_6, %c0_7] : memref<29x29xf32, #tpu.memory_space<vmem>>, vector<29x29xf32>
    %c0_8 = arith.constant 0 : index
    %c0_9 = arith.constant 0 : index
    %10 = vector.load %arg5[%c0_8, %c0_9] : memref<29x29xf32, #tpu.memory_space<vmem>>, vector<29x29xf32>
    %c0_10 = arith.constant 0 : index
    %c0_11 = arith.constant 0 : index
    %11 = vector.load %arg6[%c0_10, %c0_11] : memref<29x29xf32, #tpu.memory_space<vmem>>, vector<29x29xf32>
    %c0_12 = arith.constant 0 : index
    %c0_13 = arith.constant 0 : index
    %12 = vector.load %arg7[%c0_12, %c0_13] : memref<1x29xf32, #tpu.memory_space<vmem>>, vector<1x29xf32>
    %13 = vector.shape_cast %12 : vector<1x29xf32> to vector<1x29xf32>
    %14 = vector.broadcast %13 : vector<1x29xf32> to vector<2x29xf32>
    %c0_14 = arith.constant 0 : index
    %c0_15 = arith.constant 0 : index
    %15 = vector.load %arg11[%c0_14, %c0_15] : memref<2x29xf32, #tpu.memory_space<vmem>>, vector<2x29xf32>
    %c0_16 = arith.constant 0 : index
    %c0_17 = arith.constant 0 : index
    %16 = vector.load %arg12[%c0_16, %c0_17] : memref<2x29xf32, #tpu.memory_space<vmem>>, vector<2x29xf32>
    %17 = vector.extract_strided_slice %8 {offsets = [0, 0], sizes = [2, 29], strides = [1, 1]} : vector<16x29xf32> to vector<2x29xf32>
    %cst_18 = arith.constant dense<0.000000e+00> : vector<2x29xf32>
    %18 = tpu.matmul %15, %9, %cst_18 {dimension_numbers = #tpu.dot_dimension_numbers<[1], [0], [0], [1], [0, 0, 1, 1], [], []>} : vector<2x29xf32>, vector<29x29xf32>, vector<2x29xf32> -> vector<2x29xf32>
    %19 = arith.addf %17, %18 : vector<2x29xf32>
    %20 = math.tanh %19 : vector<2x29xf32>
    %cst_19 = arith.constant dense<0.000000e+00> : vector<2x29xf32>
    %21 = tpu.matmul %20, %10, %cst_19 {dimension_numbers = #tpu.dot_dimension_numbers<[1], [0], [0], [1], [0, 0, 1, 1], [], []>} : vector<2x29xf32>, vector<29x29xf32>, vector<2x29xf32> -> vector<2x29xf32>
    %cst_20 = arith.constant dense<0.000000e+00> : vector<2x29xf32>
    %22 = tpu.matmul %16, %11, %cst_20 {dimension_numbers = #tpu.dot_dimension_numbers<[1], [0], [0], [1], [0, 0, 1, 1], [], []>} : vector<2x29xf32>, vector<29x29xf32>, vector<2x29xf32> -> vector<2x29xf32>
    %23 = arith.addf %21, %22 : vector<2x29xf32>
    %24 = arith.addf %23, %14 : vector<2x29xf32>
    %25 = math.tanh %24 : vector<2x29xf32>
    %26 = vector.extract_strided_slice %8 {offsets = [2, 0], sizes = [2, 29], strides = [1, 1]} : vector<16x29xf32> to vector<2x29xf32>
    %cst_21 = arith.constant dense<0.000000e+00> : vector<2x29xf32>
    %27 = tpu.matmul %20, %9, %cst_21 {dimension_numbers = #tpu.dot_dimension_numbers<[1], [0], [0], [1], [0, 0, 1, 1], [], []>} : vector<2x29xf32>, vector<29x29xf32>, vector<2x29xf32> -> vector<2x29xf32>
    %28 = arith.addf %26, %27 : vector<2x29xf32>
    %29 = math.tanh %28 : vector<2x29xf32>
    %cst_22 = arith.constant dense<0.000000e+00> : vector<2x29xf32>
    %30 = tpu.matmul %29, %10, %cst_22 {dimension_numbers = #tpu.dot_dimension_numbers<[1], [0], [0], [1], [0, 0, 1, 1], [], []>} : vector<2x29xf32>, vector<29x29xf32>, vector<2x29xf32> -> vector<2x29xf32>
    %cst_23 = arith.constant dense<0.000000e+00> : vector<2x29xf32>
    %31 = tpu.matmul %25, %11, %cst_23 {dimension_numbers = #tpu.dot_dimension_numbers<[1], [0], [0], [1], [0, 0, 1, 1], [], []>} : vector<2x29xf32>, vector<29x29xf32>, vector<2x29xf32> -> vector<2x29xf32>
    %32 = arith.addf %30, %31 : vector<2x29xf32>
    %33 = arith.addf %32, %14 : vector<2x29xf32>
    %34 = math.tanh %33 : vector<2x29xf32>
    %35 = vector.extract_strided_slice %8 {offsets = [4, 0], sizes = [2, 29], strides = [1, 1]} : vector<16x29xf32> to vector<2x29xf32>
    %cst_24 = arith.constant dense<0.000000e+00> : vector<2x29xf32>
    %36 = tpu.matmul %29, %9, %cst_24 {dimension_numbers = #tpu.dot_dimension_numbers<[1], [0], [0], [1], [0, 0, 1, 1], [], []>} : vector<2x29xf32>, vector<29x29xf32>, vector<2x29xf32> -> vector<2x29xf32>
    %37 = arith.addf %35, %36 : vector<2x29xf32>
    %38 = math.tanh %37 : vector<2x29xf32>
    %cst_25 = arith.constant dense<0.000000e+00> : vector<2x29xf32>
    %39 = tpu.matmul %38, %10, %cst_25 {dimension_numbers = #tpu.dot_dimension_numbers<[1], [0], [0], [1], [0, 0, 1, 1], [], []>} : vector<2x29xf32>, vector<29x29xf32>, vector<2x29xf32> -> vector<2x29xf32>
    %cst_26 = arith.constant dense<0.000000e+00> : vector<2x29xf32>
    %40 = tpu.matmul %34, %11, %cst_26 {dimension_numbers = #tpu.dot_dimension_numbers<[1], [0], [0], [1], [0, 0, 1, 1], [], []>} : vector<2x29xf32>, vector<29x29xf32>, vector<2x29xf32> -> vector<2x29xf32>
    %41 = arith.addf %39, %40 : vector<2x29xf32>
    %42 = arith.addf %41, %14 : vector<2x29xf32>
    %43 = math.tanh %42 : vector<2x29xf32>
    %44 = vector.extract_strided_slice %8 {offsets = [6, 0], sizes = [2, 29], strides = [1, 1]} : vector<16x29xf32> to vector<2x29xf32>
    %cst_27 = arith.constant dense<0.000000e+00> : vector<2x29xf32>
    %45 = tpu.matmul %38, %9, %cst_27 {dimension_numbers = #tpu.dot_dimension_numbers<[1], [0], [0], [1], [0, 0, 1, 1], [], []>} : vector<2x29xf32>, vector<29x29xf32>, vector<2x29xf32> -> vector<2x29xf32>
    %46 = arith.addf %44, %45 : vector<2x29xf32>
    %47 = math.tanh %46 : vector<2x29xf32>
    %cst_28 = arith.constant dense<0.000000e+00> : vector<2x29xf32>
    %48 = tpu.matmul %47, %10, %cst_28 {dimension_numbers = #tpu.dot_dimension_numbers<[1], [0], [0], [1], [0, 0, 1, 1], [], []>} : vector<2x29xf32>, vector<29x29xf32>, vector<2x29xf32> -> vector<2x29xf32>
    %cst_29 = arith.constant dense<0.000000e+00> : vector<2x29xf32>
    %49 = tpu.matmul %43, %11, %cst_29 {dimension_numbers = #tpu.dot_dimension_numbers<[1], [0], [0], [1], [0, 0, 1, 1], [], []>} : vector<2x29xf32>, vector<29x29xf32>, vector<2x29xf32> -> vector<2x29xf32>
    %50 = arith.addf %48, %49 : vector<2x29xf32>
    %51 = arith.addf %50, %14 : vector<2x29xf32>
    %52 = math.tanh %51 : vector<2x29xf32>
    %53 = vector.extract_strided_slice %8 {offsets = [8, 0], sizes = [2, 29], strides = [1, 1]} : vector<16x29xf32> to vector<2x29xf32>
    %cst_30 = arith.constant dense<0.000000e+00> : vector<2x29xf32>
    %54 = tpu.matmul %47, %9, %cst_30 {dimension_numbers = #tpu.dot_dimension_numbers<[1], [0], [0], [1], [0, 0, 1, 1], [], []>} : vector<2x29xf32>, vector<29x29xf32>, vector<2x29xf32> -> vector<2x29xf32>
    %55 = arith.addf %53, %54 : vector<2x29xf32>
    %56 = math.tanh %55 : vector<2x29xf32>
    %cst_31 = arith.constant dense<0.000000e+00> : vector<2x29xf32>
    %57 = tpu.matmul %56, %10, %cst_31 {dimension_numbers = #tpu.dot_dimension_numbers<[1], [0], [0], [1], [0, 0, 1, 1], [], []>} : vector<2x29xf32>, vector<29x29xf32>, vector<2x29xf32> -> vector<2x29xf32>
    %cst_32 = arith.constant dense<0.000000e+00> : vector<2x29xf32>
    %58 = tpu.matmul %52, %11, %cst_32 {dimension_numbers = #tpu.dot_dimension_numbers<[1], [0], [0], [1], [0, 0, 1, 1], [], []>} : vector<2x29xf32>, vector<29x29xf32>, vector<2x29xf32> -> vector<2x29xf32>
    %59 = arith.addf %57, %58 : vector<2x29xf32>
    %60 = arith.addf %59, %14 : vector<2x29xf32>
    %61 = math.tanh %60 : vector<2x29xf32>
    %62 = vector.extract_strided_slice %8 {offsets = [10, 0], sizes = [2, 29], strides = [1, 1]} : vector<16x29xf32> to vector<2x29xf32>
    %cst_33 = arith.constant dense<0.000000e+00> : vector<2x29xf32>
    %63 = tpu.matmul %56, %9, %cst_33 {dimension_numbers = #tpu.dot_dimension_numbers<[1], [0], [0], [1], [0, 0, 1, 1], [], []>} : vector<2x29xf32>, vector<29x29xf32>, vector<2x29xf32> -> vector<2x29xf32>
    %64 = arith.addf %62, %63 : vector<2x29xf32>
    %65 = math.tanh %64 : vector<2x29xf32>
    %cst_34 = arith.constant dense<0.000000e+00> : vector<2x29xf32>
    %66 = tpu.matmul %65, %10, %cst_34 {dimension_numbers = #tpu.dot_dimension_numbers<[1], [0], [0], [1], [0, 0, 1, 1], [], []>} : vector<2x29xf32>, vector<29x29xf32>, vector<2x29xf32> -> vector<2x29xf32>
    %cst_35 = arith.constant dense<0.000000e+00> : vector<2x29xf32>
    %67 = tpu.matmul %61, %11, %cst_35 {dimension_numbers = #tpu.dot_dimension_numbers<[1], [0], [0], [1], [0, 0, 1, 1], [], []>} : vector<2x29xf32>, vector<29x29xf32>, vector<2x29xf32> -> vector<2x29xf32>
    %68 = arith.addf %66, %67 : vector<2x29xf32>
    %69 = arith.addf %68, %14 : vector<2x29xf32>
    %70 = math.tanh %69 : vector<2x29xf32>
    %71 = vector.extract_strided_slice %8 {offsets = [12, 0], sizes = [2, 29], strides = [1, 1]} : vector<16x29xf32> to vector<2x29xf32>
    %cst_36 = arith.constant dense<0.000000e+00> : vector<2x29xf32>
    %72 = tpu.matmul %65, %9, %cst_36 {dimension_numbers = #tpu.dot_dimension_numbers<[1], [0], [0], [1], [0, 0, 1, 1], [], []>} : vector<2x29xf32>, vector<29x29xf32>, vector<2x29xf32> -> vector<2x29xf32>
    %73 = arith.addf %71, %72 : vector<2x29xf32>
    %74 = math.tanh %73 : vector<2x29xf32>
    %cst_37 = arith.constant dense<0.000000e+00> : vector<2x29xf32>
    %75 = tpu.matmul %74, %10, %cst_37 {dimension_numbers = #tpu.dot_dimension_numbers<[1], [0], [0], [1], [0, 0, 1, 1], [], []>} : vector<2x29xf32>, vector<29x29xf32>, vector<2x29xf32> -> vector<2x29xf32>
    %cst_38 = arith.constant dense<0.000000e+00> : vector<2x29xf32>
    %76 = tpu.matmul %70, %11, %cst_38 {dimension_numbers = #tpu.dot_dimension_numbers<[1], [0], [0], [1], [0, 0, 1, 1], [], []>} : vector<2x29xf32>, vector<29x29xf32>, vector<2x29xf32> -> vector<2x29xf32>
    %77 = arith.addf %75, %76 : vector<2x29xf32>
    %78 = arith.addf %77, %14 : vector<2x29xf32>
    %79 = math.tanh %78 : vector<2x29xf32>
    %80 = vector.extract_strided_slice %8 {offsets = [14, 0], sizes = [2, 29], strides = [1, 1]} : vector<16x29xf32> to vector<2x29xf32>
    %cst_39 = arith.constant dense<0.000000e+00> : vector<2x29xf32>
    %81 = tpu.matmul %74, %9, %cst_39 {dimension_numbers = #tpu.dot_dimension_numbers<[1], [0], [0], [1], [0, 0, 1, 1], [], []>} : vector<2x29xf32>, vector<29x29xf32>, vector<2x29xf32> -> vector<2x29xf32>
    %82 = arith.addf %80, %81 : vector<2x29xf32>
    %83 = math.tanh %82 : vector<2x29xf32>
    %cst_40 = arith.constant dense<0.000000e+00> : vector<2x29xf32>
    %84 = tpu.matmul %83, %10, %cst_40 {dimension_numbers = #tpu.dot_dimension_numbers<[1], [0], [0], [1], [0, 0, 1, 1], [], []>} : vector<2x29xf32>, vector<29x29xf32>, vector<2x29xf32> -> vector<2x29xf32>
    %cst_41 = arith.constant dense<0.000000e+00> : vector<2x29xf32>
    %85 = tpu.matmul %79, %11, %cst_41 {dimension_numbers = #tpu.dot_dimension_numbers<[1], [0], [0], [1], [0, 0, 1, 1], [], []>} : vector<2x29xf32>, vector<29x29xf32>, vector<2x29xf32> -> vector<2x29xf32>
    %86 = arith.addf %84, %85 : vector<2x29xf32>
    %87 = arith.addf %86, %14 : vector<2x29xf32>
    %88 = math.tanh %87 : vector<2x29xf32>
    %c0_42 = arith.constant 0 : index
    %c0_43 = arith.constant 0 : index
    %89 = vector.load %arg11[%c0_42, %c0_43] : memref<2x29xf32, #tpu.memory_space<vmem>>, vector<2x29xf32>
    tpu.vector_store %arg11[%c0_42, %c0_43], %83 {strides = array<i32>} : memref<2x29xf32, #tpu.memory_space<vmem>>, vector<2x29xf32>,
    %c0_44 = arith.constant 0 : index
    %c0_45 = arith.constant 0 : index
    %90 = vector.load %arg12[%c0_44, %c0_45] : memref<2x29xf32, #tpu.memory_space<vmem>>, vector<2x29xf32>
    tpu.vector_store %arg12[%c0_44, %c0_45], %88 {strides = array<i32>} : memref<2x29xf32, #tpu.memory_space<vmem>>, vector<2x29xf32>,
    %91 = tpu.concatenate %25, %34, %43, %52, %61, %70, %79, %88 in 0 : vector<2x29xf32>, vector<2x29xf32>, vector<2x29xf32>, vector<2x29xf32>, vector<2x29xf32>, vector<2x29xf32>, vector<2x29xf32>, vector<2x29xf32> -> vector<16x29xf32>
    %c0_46 = arith.constant 0 : index
    %c0_47 = arith.constant 0 : index
    %92 = vector.load %arg8[%c0_46, %c0_47] : memref<29x11xf32, #tpu.memory_space<vmem>>, vector<29x11xf32>
    %cst_48 = arith.constant dense<0.000000e+00> : vector<16x11xf32>
    %93 = tpu.matmul %91, %92, %cst_48 {dimension_numbers = #tpu.dot_dimension_numbers<[1], [0], [0], [1], [0, 0, 1, 1], [], []>} : vector<16x29xf32>, vector<29x11xf32>, vector<16x11xf32> -> vector<16x11xf32>
    %c0_49 = arith.constant 0 : index
    %c0_50 = arith.constant 0 : index
    %94 = vector.load %arg9[%c0_49, %c0_50] : memref<1x11xf32, #tpu.memory_space<vmem>>, vector<1x11xf32>
    %95 = vector.broadcast %94 : vector<1x11xf32> to vector<16x11xf32>
    %96 = arith.addf %93, %95 : vector<16x11xf32>
    %97 = math.tanh %96 : vector<16x11xf32>
    %c0_51 = arith.constant 0 : index
    %c0_52 = arith.constant 0 : index
    %98 = vector.load %arg10[%c0_51, %c0_52] : memref<16x11xf32, #tpu.memory_space<vmem>>, vector<16x11xf32>
    tpu.vector_store %arg10[%c0_51, %c0_52], %97 {strides = array<i32>} : memref<16x11xf32, #tpu.memory_space<vmem>>, vector<16x11xf32>,
    return
  }
  func.func @transform_0(%arg0: i32) -> (i32, i32) {
    %c0_i32 = arith.constant 0 : i32
    %c0_i32_0 = arith.constant 0 : i32
    return %arg0, %c0_i32 : i32, i32
  }
  func.func @transform_1(%arg0: i32) -> (i32, i32) {
    %c0_i32 = arith.constant 0 : i32
    %c0_i32_0 = arith.constant 0 : i32
    %c0_i32_1 = arith.constant 0 : i32
    return %c0_i32, %c0_i32_0 : i32, i32
  }
  func.func @transform_2(%arg0: i32) -> (i32, i32) {
    %c0_i32 = arith.constant 0 : i32
    %c0_i32_0 = arith.constant 0 : i32
    %c0_i32_1 = arith.constant 0 : i32
    return %c0_i32, %c0_i32_0 : i32, i32
  }
  func.func @transform_3(%arg0: i32) -> (i32, i32) {
    %c0_i32 = arith.constant 0 : i32
    %c0_i32_0 = arith.constant 0 : i32
    %c0_i32_1 = arith.constant 0 : i32
    return %c0_i32, %c0_i32_0 : i32, i32
  }
  func.func @transform_4(%arg0: i32) -> (i32, i32) {
    %c0_i32 = arith.constant 0 : i32
    %c0_i32_0 = arith.constant 0 : i32
    %c0_i32_1 = arith.constant 0 : i32
    return %c0_i32, %c0_i32_0 : i32, i32
  }
  func.func @transform_5(%arg0: i32) -> (i32, i32) {
    %c0_i32 = arith.constant 0 : i32
    %c0_i32_0 = arith.constant 0 : i32
    %c0_i32_1 = arith.constant 0 : i32
    return %c0_i32, %c0_i32_0 : i32, i32
  }
  func.func @transform_6(%arg0: i32) -> (i32, i32) {
    %c0_i32 = arith.constant 0 : i32
    %c0_i32_0 = arith.constant 0 : i32
    %c0_i32_1 = arith.constant 0 : i32
    return %c0_i32, %c0_i32_0 : i32, i32
  }
  func.func @transform_7(%arg0: i32) -> (i32, i32) {
    %c0_i32 = arith.constant 0 : i32
    %c0_i32_0 = arith.constant 0 : i32
    %c0_i32_1 = arith.constant 0 : i32
    return %c0_i32, %c0_i32_0 : i32, i32
  }
  func.func @transform_8(%arg0: i32) -> (i32, i32) {
    %c0_i32 = arith.constant 0 : i32
    %c0_i32_0 = arith.constant 0 : i32
    %c0_i32_1 = arith.constant 0 : i32
    return %c0_i32, %c0_i32_0 : i32, i32
  }
  func.func @transform_9(%arg0: i32) -> (i32, i32) {
    %c0_i32 = arith.constant 0 : i32
    %c0_i32_0 = arith.constant 0 : i32
    return %arg0, %c0_i32 : i32, i32
  }
}

</mosaic_0001>

<bundles_post_ra>
// kernel: rnn_forward.1
= control target key start
LH: loop header
LB: loop body
LE: loop exit
PB: predicated region body
PF: predicated region fallthrough
CT: control target
= control target key end

     0   :  { %vm36_vm0 = vcmask 230400   ;;  %v2752_v4 = vmov 0.0   ;;  %vm96_vm1 = vcmask 1041408   ;;  %vm89_vm2 = vcmask 277504   ;;  %s3360_s1 = inlined_call_operand.vmem [shape: f32[290,29], index: 1, kind: input, shape index: {}]   ;;  %s3361_s0 = inlined_call_operand.vmem [shape: f32[16,290], index: 0, kind: input, shape index: {}]   ;;  %s3362_s2 = inlined_call_operand.vmem [shape: f32[29,29], index: 2, kind: input, shape index: {}]   ;;  %s3363_s5 = inlined_call_operand.vmem [shape: f32[29,29], index: 5, kind: input, shape index: {}]   ;;  %s3364_s4 = inlined_call_operand.vmem [shape: f32[29,29], index: 4, kind: input, shape index: {}]   ;;  %s3365_s3 = inlined_call_operand.vmem [shape: f32[1,29], index: 3, kind: input, shape index: {}]   ;;  %s3366_s6 = inlined_call_operand.vmem [shape: f32[1,29], index: 6, kind: input, shape index: {}]   ;;  %s3367_s7 = inlined_call_operand.vmem [shape: f32[29,11], index: 7, kind: input, shape index: {}]   ;;  %s3368_s8 = inlined_call_operand.vmem [shape: f32[1,11], index: 8, kind: input, shape index: {}]   ;;  %s3369_s9 = inlined_call_operand.vmem [shape: f32[16,11], index: 9, kind: output, shape index: {}]  }
   0x1   :  { %v76_v0 = vld [vmem:[%s3360_s1 + $0xf8] sm:$0xff]  ;;  %v75_v2 = vld [vmem:[%s3360_s1 + $0xf0] sm:$0xff]  ;;  %37 = vst.msk [vmem:[#allocation2] sm:$0x3] %vm36_vm0, %v2752_v4  ;;  %38 = vst.msk [vmem:[#allocation3] sm:$0x3] %vm36_vm0, %v2752_v4 }
   0x2   :  { %v60_v1 = vld [vmem:[%s3360_s1 + $0x78] sm:$0xff]  ;;  %2255 = vmatprep.subr.mxu0 %v76_v0  ;;  %v59_v3 = vld [vmem:[%s3360_s1 + $0x70] sm:$0xff]  ;;  %v74_v5 = vld [vmem:[%s3360_s1 + $0xe8] sm:$0xff]  ;;  %vm275_vm3 = vcmask 1044480   ;;  %vm271_vm4 = vcmask 236544   ;;  %vm2753_vm5 = vmmov 0  }
   0x3   :  { %2256 = vmatpush3.msra.mxu0 %v60_v1  ;;  %v58_v6 = vld [vmem:[%s3360_s1 + $0x68] sm:$0xff]  ;;  %v73_v7 = vld [vmem:[%s3360_s1 + $0xe0] sm:$0xff]  ;;  %v72_v9 = vld [vmem:[%s3360_s1 + $0xd8] sm:$0xff]  ;;  %vm2087_vm6 = vcmask 1043456   ;;  %vm2089_vm7 = vcmask 1045504   ;;  %vm2069_vm8 = vcmask 236550  }
   0x4   :  { %2257 = vmatprep.subr.mxu0 %v75_v2  ;;  %v57_v8 = vld [vmem:[%s3360_s1 + $0x60] sm:$0xff]  ;;  %v56_v10 = vld [vmem:[%s3360_s1 + $0x58] sm:$0xff]  ;;  %v71_v12 = vld [vmem:[%s3360_s1 + $0xd0] sm:$0xff]  ;;  %vm2191_vm9 = vcmask 89088  }
   0x5   :  { %2258 = vmatpush3.msra.mxu0 %v59_v3  ;;  %v81_v11 = vld [vmem:[%s3360_s1 + $0x120] sm:$0x3]  ;;  %v80_v13 = vld [vmem:[%s3360_s1 + $0x118] sm:$0xff]  ;;  %v55_v14 = vld [vmem:[%s3360_s1 + $0x50] sm:$0xff] }
   0x6   :  { %2259 = vmatprep.subr.mxu0 %v74_v5  ;;  %2426 = vmatprep.subr.msk.mxu1 %vm96_vm1, %v81_v11  ;;  %v79_v15 = vld [vmem:[%s3360_s1 + $0x110] sm:$0xff]  ;;  %v70_v16 = vld [vmem:[%s3360_s1 + $0xc8] sm:$0xff]  ;;  %v69_v19 = vld [vmem:[%s3360_s1 + $0xc0] sm:$0xff] }
   0x7   :  { %2260 = vmatpush3.msra.mxu0 %v58_v6  ;;  %2427 = vmatpush3.msk.msra.mxu1 %vm96_vm1, %v81_v11  ;;  %v54_v17 = vld [vmem:[%s3360_s1 + $0x48] sm:$0xff]  ;;  %v53_v20 = vld [vmem:[%s3360_s1 + $0x40] sm:$0xff]  ;;  %v68_v22 = vld [vmem:[%s3360_s1 + $0xb8] sm:$0xff] }
   0x8   :  { %2261 = vmatprep.subr.mxu0 %v73_v7  ;;  %2428 = vmatprep.subr.mxu1 %v80_v13  ;;  %v78_v18 = vld [vmem:[%s3360_s1 + $0x108] sm:$0xff]  ;;  %v77_v21 = vld [vmem:[%s3360_s1 + $0x100] sm:$0xff]  ;;  %v52_v23 = vld [vmem:[%s3360_s1 + $0x38] sm:$0xff] }
   0x9   :  { %2262 = vmatpush3.msra.mxu0 %v57_v8  ;;  %2429 = vmatpush3.msra.mxu1 %v80_v13  ;;  %v41_v24 = vld [vmem:[%s3361_s0 + $0x10] sm:$0xff]  ;;  %v40_v27 = vld [vmem:[%s3361_s0 + $0x8] sm:$0xff]  ;;  %v2905_v31 = vld [vmem:[%s3362_s2 + $0x18] sm:$0x1f] }
   0xa   :  { %2263 = vmatprep.subr.mxu0 %v72_v9  ;;  %2430 = vmatprep.subr.mxu1 %v79_v15  ;;  %v67_v25 = vld [vmem:[%s3360_s1 + $0xb0] sm:$0xff]  ;;  %v66_v28 = vld [vmem:[%s3360_s1 + $0xa8] sm:$0xff]  ;;  %v65_v32 = vld [vmem:[%s3360_s1 + $0xa0] sm:$0xff] }
   0xb   :  { %2264 = vmatpush3.msra.mxu0 %v56_v10  ;;  %2431 = vmatpush3.msra.mxu1 %v79_v15  ;;  %v51_v26 = vld [vmem:[%s3360_s1 + $0x30] sm:$0xff]  ;;  %v44_v29 = vld [vmem:[%s3361_s0 + $0x28] sm:$0xff]  ;;  %v49_v33 = vld [vmem:[%s3360_s1 + $0x20] sm:$0xff] }
   0xc   :  { %2265 = vmatprep.subr.mxu0 %v71_v12  ;;  %2432 = vmatprep.subr.mxu1 %v78_v18  ;;  %v50_v30 = vld [vmem:[%s3360_s1 + $0x28] sm:$0xff]  ;;  %v2917_v34 = vld [vmem:[%s3362_s2 + $0x10] sm:$0xff]  ;;  %v64_v35 = vld [vmem:[%s3360_s1 + $0x98] sm:$0xff] }
   0xd   :  { %2266 = vmatpush3.msra.mxu0 %v55_v14  ;;  %2433 = vmatpush3.msra.mxu1 %v78_v18  ;;  %v48_v36 = vld [vmem:[%s3360_s1 + $0x18] sm:$0xff]  ;;  %v2931_v37 = vld [vmem:[%s3362_s2 + $0x8] sm:$0xff]  ;;  %v63_v38 = vld [vmem:[%s3360_s1 + $0x90] sm:$0xff] }
   0xe   :  { %2267 = vmatprep.subr.mxu0 %v70_v16  ;;  %2434 = vmatprep.subr.mxu1 %v77_v21  ;;  %v47_v39 = vld [vmem:[%s3360_s1 + $0x10] sm:$0xff]  ;;  %v2944_v40 = vld [vmem:[%s3362_s2] sm:$0xff]  ;;  %v62_v41 = vld [vmem:[%s3360_s1 + $0x88] sm:$0xff] }
   0xf   :  { %2268 = vmatpush3.msra.mxu0 %v54_v17  ;;  %2435 = vmatpush3.msra.mxu1 %v77_v21  ;;  %v46_v42 = vld [vmem:[%s3360_s1 + $0x8] sm:$0xff]  ;;  %v269_v43 = vld [vmem:[#allocation2] sm:$0x3]  ;;  %v42_v48 = vld [vmem:[%s3361_s0 + $0x18] sm:$0xff] }
  0x10   :  { %2269 = vmatprep.subr.mxu0 %v69_v19  ;;  %2436 = vmatprep.mubr.msk.f32.mxu1 %vm89_vm2, %v41_v24  ;;  %v61_v44 = vld [vmem:[%s3360_s1 + $0x80] sm:$0xff]  ;;  %v2991_v49 = vld [vmem:[%s3363_s5 + $0x18] sm:$0x1f]  ;;  %v2999_v50 = vld [vmem:[%s3363_s5 + $0x10] sm:$0xff] }
  0x11   :  { %2270 = vmatpush3.msra.mxu0 %v53_v20  ;;  %2439 = vmatprep.subr.mxu1 %v2752_v4  ;;  %v45_v45 = vld [vmem:[%s3360_s1] sm:$0xff]  ;;  %v3005_v51 = vld [vmem:[%s3363_s5 + $0x8] sm:$0xff]  ;;  %v3018_v54 = vld [vmem:[%s3364_s4 + $0x18] sm:$0x1f] }
  0x12   :  { %2271 = vmatprep.subr.mxu0 %v68_v22  ;;  %164 = vmatprep.mubr.f32.mxu0 %v40_v27  ;;  %v39_v46 = vld [vmem:[%s3361_s0] sm:$0xff]  ;;  %v3026_v55 = vld [vmem:[%s3364_s4 + $0x10] sm:$0xff]  ;;  %v3036_v56 = vld [vmem:[%s3364_s4 + $0x8] sm:$0xff] }
  0x13   :  { %2272 = vmatpush3.msra.mxu0 %v52_v23  ;;  %2437 = vmatmul.mubr.msk.f32.vlgmr.msra.gmra.mxu1 %vm89_vm2, %v44_v29  ;;  %v43_v47 = vld [vmem:[%s3361_s0 + $0x20] sm:$0xff] }
  0x14   :  { %2273 = vmatprep.subr.mxu0 %v67_v25  ;;  %2440 = vmatpush3.msk.msra.mxu1 %vm275_vm3, %v2905_v31  ;;  %v3011_v52 = vld [vmem:[%s3363_s5] sm:$0xff] }
  0x15   :  { %2274 = vmatpush3.msra.mxu0 %v51_v26  ;;  %2441 = vmatprep.subr.mxu1 %v2752_v4  ;;  %v270_v53 = vld [vmem:[#allocation3] sm:$0x3]  ;;  %v2198_v63 = vld [vmem:[%s3365_s3] ss:$0 sm:$0xff] }
  0x16   :  { %2275 = vmatprep.subr.mxu0 %v66_v28  ;;  %2442 = vmatpush3.msra.mxu1 %v2917_v34  ;;  %v3043_v57 = vld [vmem:[%s3364_s4] sm:$0xff] }
  0x17   :  { %2276 = vmatpush3.msra.mxu0 %v50_v30  ;;  %2443 = vmatprep.subr.mxu1 %v2752_v4  ;;  %v3084_v14 = vld [vmem:[%s3366_s6] ss:$0 sm:$0xff] }
  0x18   :  { %2277 = vmatprep.subr.mxu0 %v65_v32  ;;  %2444 = vmatpush3.msra.mxu1 %v2931_v37 }
  0x19   :  { %2278 = vmatpush3.msra.mxu0 %v49_v33  ;;  %2445 = vmatprep.subr.mxu1 %v2752_v4 }
  0x1a   :  { %2279 = vmatprep.subr.mxu0 %v64_v35  ;;  %2446 = vmatpush3.msra.mxu1 %v2944_v40 }
  0x1b   :  { %2280 = vmatpush3.msra.mxu0 %v48_v36  ;;  %2447 = vmatprep.mubr.msk.f32.mxu1 %vm2753_vm5, %v2752_v4 }
  0x1c   :  { %2281 = vmatprep.subr.mxu0 %v63_v38  ;;  %2448 = vmatmul.mubr.msk.f32.vlgmr.msra.gmra.mxu1 %vm271_vm4, %v269_v43 }
  0x1d   :  { %2282 = vmatpush3.msra.mxu0 %v47_v39  ;;  %2450 = vmatprep.subr.mxu1 %v2752_v4 }
  0x1e   :  { %2283 = vmatprep.subr.mxu0 %v62_v41  ;;  %2458 = vmatprep.mubr.msk.f32.mxu1 %vm2753_vm5, %v2752_v4 }
  0x1f   :  { %2284 = vmatpush3.msra.mxu0 %v46_v42  ;;  %2451 = vmatpush3.msk.msra.mxu1 %vm275_vm3, %v2991_v49 }
  0x20   :  { %2285 = vmatprep.subr.mxu0 %v61_v44  ;;  %2452 = vmatprep.subr.mxu1 %v2752_v4 }
  0x21   :  { %2286 = vmatpush3.msra.mxu0 %v45_v45  ;;  %2453 = vmatpush3.msra.mxu1 %v2999_v50 }
  0x22   :  { %165 = vmatmul.mubr.f32.vlgmr.msra.gmra.mxu0 %v39_v46  ;;  %2472 = vmatprep.subr.mxu0 %v2752_v4 }
  0x23   :  { %169 = vmatprep.mubr.f32.mxu0 %v43_v47  ;;  %2473 = vmatpush3.msk.msra.mxu0 %vm275_vm3, %v2905_v31 }
  0x24   :  { %2474 = vmatprep.subr.mxu0 %v2752_v4  ;;  %2454 = vmatprep.subr.mxu1 %v2752_v4 }
  0x25   :  { %2475 = vmatpush3.msra.mxu0 %v2917_v34  ;;  %2455 = vmatpush3.msra.mxu1 %v3005_v51 }
  0x26   :  { %170 = vmatmul.mubr.f32.gmra.mxu0 %v42_v48  ;;  %2476 = vmatprep.subr.mxu0 %v2752_v4 }
  0x27   :  { %2477 = vmatpush3.msra.mxu0 %v2931_v37  ;;  %2480 = vmatprep.mubr.msk.f32.mxu0 %vm2753_vm5, %v2752_v4 }
  0x28   :  { %2478 = vmatprep.subr.mxu0 %v2752_v4  ;;  %2456 = vmatprep.subr.mxu1 %v2752_v4 }
  0x29   :  { %2479 = vmatpush3.msra.mxu0 %v2944_v40  ;;  %2457 = vmatpush3.msra.mxu1 %v3011_v52 }
  0x2a   :  { %2494 = vmatprep.subr.mxu0 %v2752_v4  ;;  %2459 = vmatmul.mubr.msk.f32.vlgmr.msra.gmra.mxu1 %vm271_vm4, %v270_v53 }
  0x2b   :  { %2461 = vmatprep.subr.mxu1 %v2752_v4  ;;  %2469 = vmatprep.mubr.msk.f32.mxu1 %vm2753_vm5, %v2752_v4 }
  0x2c   :  { %2462 = vmatpush3.msk.msra.mxu1 %vm275_vm3, %v3018_v54 }
  0x2d   :  { %2463 = vmatprep.subr.mxu1 %v2752_v4 }
  0x2e   :  { %2464 = vmatpush3.msra.mxu1 %v3026_v55 }
  0x2f   :  { %2465 = vmatprep.subr.mxu1 %v2752_v4 }
  0x30   :  { %2466 = vmatpush3.msra.mxu1 %v3036_v56 }
  0x31   :  { %2467 = vmatprep.subr.mxu1 %v2752_v4 }
  0x32   :  { %2468 = vmatpush3.msra.mxu1 %v3043_v57 }
  0x33   :  { %2483 = vmatprep.subr.mxu1 %v2752_v4 }
  0xd3   :  { %v2438_v58 = vpop.f32.mrf.mxu1 }
  0xd5   :  { %v241_v59 = vpop.f32.mrf.mxu1 }
  0xdc   :  { %v345_v60 = vpop.f32.mrf.mxu1 }
  0xde   :  { %v2449_v61 = vpop.f32.mrf.mxu1 }
  0xe2   :  { %v2287_v62 = vpop.f32.mrf.mxu0 }
  0xe4   :  { %v2288_v0 = vpop.f32.mrf.mxu0 }
  0xe5   :  { %v2289_v1 = vadd.f32 %v2288_v0, %v2287_v62 }
  0xe6   :  { %v2290_v2 = vpop.f32.mrf.mxu0 }
  0xe7   :  { %v167_v3 = vadd.f32 %v2289_v1, %v2198_v63 }
  0xe8   :  { %v2291_v5 = vpop.f32.mrf.mxu0 }
  0xe9   :  { %v3052_v6 = vadd.f32 %v241_v59, %v167_v3  ;;  %v2292_v7 = vadd.f32 %v2291_v5, %v2290_v2 }
  0xea   :  { %v423_v12 = vpop.f32.mrf.mxu1 }
  0xeb   :  { %v172_v8 = vadd.f32 %v2292_v7, %v2198_v63  ;;  %v349_v9 = vadd.f32 %v345_v60, %v3052_v6 }
  0xec   :  { %v2460_v13 = vpop.f32.mrf.mxu1 }
  0xed   :  { %v3055_v10 = vadd.f32 %v2438_v58, %v172_v8  ;;  %2716 = vtanh.f32 %v349_v9 }
  0xfa   :  { %v2717_v11 = vpop.eup %2716 }
  0xfb   :  { %2470 = vmatmul.mubr.msk.f32.vlgmr.msra.gmra.mxu1 %vm271_vm4, %v2717_v11  ;;  %2481 = vmatmul.mubr.msk.f32.vlgmr.msra.gmra.mxu0 %vm271_vm4, %v2717_v11 }
  0xfc   :  { %2484 = vmatpush3.msk.msra.mxu1 %vm275_vm3, %v2991_v49  ;;  %2495 = vmatpush3.msk.msra.mxu0 %vm275_vm3, %v3018_v54 }
  0xfd   :  { %2485 = vmatprep.subr.mxu1 %v2752_v4  ;;  %2496 = vmatprep.subr.mxu0 %v2752_v4 }
  0xfe   :  { %2486 = vmatpush3.msra.mxu1 %v2999_v50  ;;  %2497 = vmatpush3.msra.mxu0 %v3026_v55 }
  0xff   :  { %2487 = vmatprep.subr.mxu1 %v2752_v4  ;;  %2498 = vmatprep.subr.mxu0 %v2752_v4 }
 0x100   :  { %2488 = vmatpush3.msra.mxu1 %v3005_v51  ;;  %2491 = vmatprep.mubr.msk.f32.mxu1 %vm2753_vm5, %v2752_v4 }
 0x101   :  { %2489 = vmatprep.subr.mxu1 %v2752_v4  ;;  %2499 = vmatpush3.msra.mxu0 %v3036_v56 }
 0x102   :  { %2490 = vmatpush3.msra.mxu1 %v3011_v52  ;;  %2500 = vmatprep.subr.mxu0 %v2752_v4 }
 0x103   :  { %2505 = vmatprep.subr.mxu1 %v2752_v4  ;;  %2501 = vmatpush3.msra.mxu0 %v3043_v57 }
 0x104   :  { %2502 = vmatprep.mubr.msk.f32.mxu0 %vm2753_vm5, %v2752_v4  ;;  %2516 = vmatprep.subr.mxu0 %v2752_v4 }
 0x1bb   :  { %v499_v15 = vpop.f32.mrf.mxu1  ;;  %v571_v16 = vpop.f32.mrf.mxu0 }
 0x1bc   :  { %v500_v17 = vadd.f32 %v499_v15, %v423_v12  ;;  %v576_v18 = vrot.slane %v571_v16, 6 }
 0x1bd   :  { %v2471_v19 = vpop.f32.mrf.mxu1  ;;  %v2482_v20 = vpop.f32.mrf.mxu0 }
 0x1be   :  { %v503_v21 = vadd.f32 %v3084_v14, %v500_v17  ;;  %v578_v22 = vadd.f32 %v576_v18, %v3052_v6 }
 0x1c0   :  { %2718 = vtanh.f32 %v503_v21 }
 0x1c1   :  { %2720 = vtanh.f32 %v578_v22 }
 0x1cd   :  { %v3088_v23 = vpop.eup %2718 }
 0x1ce   :  { %v2721_v24 = vpop.eup %2720  ;;  %2492 = vmatmul.mubr.msk.f32.vlgmr.msra.gmra.mxu1 %vm271_vm4, %v3088_v23 }
 0x1cf   :  { %v654_v25 = vrot.slane %v2721_v24, 2  ;;  %2506 = vmatpush3.msk.msra.mxu1 %vm275_vm3, %v2905_v31  ;;  %2513 = vmatprep.mubr.msk.f32.mxu1 %vm2753_vm5, %v2752_v4 }
 0x1d0   :  { %2507 = vmatprep.subr.mxu1 %v2752_v4 }
 0x1d1   :  { %2503 = vmatmul.mubr.msk.f32.vlgmr.msra.gmra.mxu0 %vm271_vm4, %v654_v25  ;;  %2508 = vmatpush3.msra.mxu1 %v2917_v34 }
 0x1d2   :  { %2509 = vmatprep.subr.mxu1 %v2752_v4  ;;  %2517 = vmatpush3.msk.msra.mxu0 %vm275_vm3, %v2991_v49 }
 0x1d3   :  { %2510 = vmatpush3.msra.mxu1 %v2931_v37  ;;  %2518 = vmatprep.subr.mxu0 %v2752_v4 }
 0x1d4   :  { %2511 = vmatprep.subr.mxu1 %v2752_v4  ;;  %2519 = vmatpush3.msra.mxu0 %v2999_v50 }
 0x1d5   :  { %2512 = vmatpush3.msra.mxu1 %v2944_v40  ;;  %2520 = vmatprep.subr.mxu0 %v2752_v4 }
 0x1d6   :  { %2514 = vmatmul.mubr.msk.f32.vlgmr.msra.gmra.mxu1 %vm271_vm4, %v654_v25  ;;  %2521 = vmatpush3.msra.mxu0 %v3005_v51 }
 0x1d7   :  { %2522 = vmatprep.subr.mxu0 %v2752_v4  ;;  %2524 = vmatprep.mubr.msk.f32.mxu0 %vm2753_vm5, %v2752_v4 }
 0x1d8   :  { %2523 = vmatpush3.msra.mxu0 %v3011_v52  ;;  %2527 = vmatprep.subr.mxu1 %v2752_v4 }
 0x1d9   :  { %2538 = vmatprep.subr.mxu0 %v2752_v4  ;;  %2528 = vmatpush3.msk.msra.mxu1 %vm275_vm3, %v3018_v54 }
 0x1da   :  { %2529 = vmatprep.subr.mxu1 %v2752_v4  ;;  %2535 = vmatprep.mubr.msk.f32.mxu1 %vm2753_vm5, %v2752_v4 }
 0x1db   :  { %2530 = vmatpush3.msra.mxu1 %v3026_v55 }
 0x1dc   :  { %2531 = vmatprep.subr.mxu1 %v2752_v4 }
 0x1dd   :  { %2532 = vmatpush3.msra.mxu1 %v3036_v56 }
 0x1de   :  { %2533 = vmatprep.subr.mxu1 %v2752_v4 }
 0x1df   :  { %2534 = vmatpush3.msra.mxu1 %v3043_v57 }
 0x1e0   :  { %2549 = vmatprep.subr.mxu1 %v2752_v4 }
 0x28e   :  { %v649_v26 = vpop.f32.mrf.mxu1 }
 0x290   :  { %v2493_v27 = vpop.f32.mrf.mxu1 }
 0x291   :  { %v723_v28 = vpop.f32.mrf.mxu0 }
 0x292   :  { %v724_v29 = vadd.f32 %v723_v28, %v649_v26 }
 0x293   :  { %v2504_v30 = vpop.f32.mrf.mxu0 }
 0x294   :  { %v727_v32 = vadd.f32 %v3084_v14, %v724_v29 }
 0x296   :  { %2722 = vtanh.f32 %v727_v32  ;;  %v795_v33 = vpop.f32.mrf.mxu1 }
 0x297   :  { %v800_v35 = vrot.slane %v795_v33, 4 }
 0x298   :  { %v2515_v36 = vpop.f32.mrf.mxu1 }
 0x299   :  { %v802_v38 = vadd.f32 %v800_v35, %v3052_v6 }
 0x29b   :  { %2724 = vtanh.f32 %v802_v38 }
 0x2a3   :  { %v2723_v39 = vpop.eup %2722 }
 0x2a4   :  { %2525 = vmatmul.mubr.msk.f32.vlgmr.msra.gmra.mxu0 %vm271_vm4, %v2723_v39  ;;  %v2073_v61 = vrot.slane %v2723_v39, 6 }
 0x2a5   :  { %2539 = vmatpush3.msk.msra.mxu0 %vm275_vm3, %v2905_v31  ;;  %2546 = vmatprep.mubr.msk.f32.mxu0 %vm2753_vm5, %v2752_v4 }
 0x2a6   :  { %2540 = vmatprep.subr.mxu0 %v2752_v4  ;;  %v2086_v2 = vsel %vm96_vm1, %v3088_v23, %v2073_v61 }
 0x2a7   :  { %2541 = vmatpush3.msra.mxu0 %v2917_v34 }
 0x2a8   :  { %v2725_v41 = vpop.eup %2724  ;;  %2542 = vmatprep.subr.mxu0 %v2752_v4 }
 0x2a9   :  { %v878_v42 = vrot.slane %v2725_v41, 4  ;;  %2543 = vmatpush3.msra.mxu0 %v2931_v37 }
 0x2aa   :  { %2544 = vmatprep.subr.mxu0 %v2752_v4 }
 0x2ab   :  { %2545 = vmatpush3.msra.mxu0 %v2944_v40  ;;  %2536 = vmatmul.mubr.msk.f32.vlgmr.msra.gmra.mxu1 %vm271_vm4, %v878_v42 }
 0x2ac   :  { %2547 = vmatmul.mubr.msk.f32.vlgmr.msra.gmra.mxu0 %vm271_vm4, %v878_v42  ;;  %2550 = vmatpush3.msk.msra.mxu1 %vm275_vm3, %v2991_v49 }
 0x2ad   :  { %2551 = vmatprep.subr.mxu1 %v2752_v4  ;;  %2560 = vmatprep.subr.mxu0 %v2752_v4 }
 0x2ae   :  { %2552 = vmatpush3.msra.mxu1 %v2999_v50  ;;  %2561 = vmatpush3.msk.msra.mxu0 %vm275_vm3, %v3018_v54 }
 0x2af   :  { %2553 = vmatprep.subr.mxu1 %v2752_v4  ;;  %2562 = vmatprep.subr.mxu0 %v2752_v4 }
 0x2b0   :  { %2554 = vmatpush3.msra.mxu1 %v3005_v51  ;;  %2563 = vmatpush3.msra.mxu0 %v3026_v55 }
 0x2b1   :  { %2555 = vmatprep.subr.mxu1 %v2752_v4  ;;  %2564 = vmatprep.subr.mxu0 %v2752_v4 }
 0x2b2   :  { %2556 = vmatpush3.msra.mxu1 %v3011_v52  ;;  %2557 = vmatprep.mubr.msk.f32.mxu1 %vm2753_vm5, %v2752_v4 }
 0x2b3   :  { %2565 = vmatpush3.msra.mxu0 %v3036_v56  ;;  %2571 = vmatprep.subr.mxu1 %v2752_v4 }
 0x2b4   :  { %2566 = vmatprep.subr.mxu0 %v2752_v4  ;;  %2568 = vmatprep.mubr.msk.f32.mxu0 %vm2753_vm5, %v2752_v4 }
 0x2b5   :  { %2567 = vmatpush3.msra.mxu0 %v3043_v57 }
 0x2b6   :  { %2582 = vmatprep.subr.mxu0 %v2752_v4 }
 0x364   :  { %v873_v43 = vpop.f32.mrf.mxu0 }
 0x366   :  { %v2526_v44 = vpop.f32.mrf.mxu0 }
 0x36b   :  { %v947_v45 = vpop.f32.mrf.mxu1 }
 0x36c   :  { %v948_v46 = vadd.f32 %v947_v45, %v873_v43  ;;  %v1019_v47 = vpop.f32.mrf.mxu0 }
 0x36d   :  { %v1024_v48 = vrot.slane %v1019_v47, 2  ;;  %v2537_v53 = vpop.f32.mrf.mxu1 }
 0x36e   :  { %v951_v58 = vadd.f32 %v3084_v14, %v948_v46  ;;  %v2548_v59 = vpop.f32.mrf.mxu0 }
 0x36f   :  { %v1026_v60 = vadd.f32 %v1024_v48, %v3052_v6 }
 0x370   :  { %2726 = vtanh.f32 %v951_v58 }
 0x371   :  { %2728 = vtanh.f32 %v1026_v60 }
 0x37d   :  { %v2727_v62 = vpop.eup %2726 }
 0x37e   :  { %v2729_v63 = vpop.eup %2728  ;;  %2558 = vmatmul.mubr.msk.f32.vlgmr.msra.gmra.mxu1 %vm271_vm4, %v2727_v62  ;;  %v2075_v0 = vrot.slane %v2727_v62, 4  ;;  %v2096_v62 = vld [vmem:[%s3367_s7 + $0x10] sm:$0xff] }
 0x37f   :  { %v1102_v1 = vrot.slane %v2729_v63, 6  ;;  %2572 = vmatpush3.msk.msra.mxu1 %vm275_vm3, %v2905_v31  ;;  %2579 = vmatprep.mubr.msk.f32.mxu1 %vm2753_vm5, %v2752_v4  ;;  %v2095_v63 = vld [vmem:[%s3367_s7 + $0x8] sm:$0xff] }
 0x380   :  { %2573 = vmatprep.subr.mxu1 %v2752_v4  ;;  %v2088_v3 = vsel %vm2087_vm6, %v2086_v2, %v2075_v0  ;;  %v2094_v0 = vld [vmem:[%s3367_s7] sm:$0xff] }
 0x381   :  { %2569 = vmatmul.mubr.msk.f32.vlgmr.msra.gmra.mxu0 %vm271_vm4, %v1102_v1  ;;  %2574 = vmatpush3.msra.mxu1 %v2917_v34 }
 0x382   :  { %2575 = vmatprep.subr.mxu1 %v2752_v4  ;;  %2583 = vmatpush3.msk.msra.mxu0 %vm275_vm3, %v2991_v49 }
 0x383   :  { %2576 = vmatpush3.msra.mxu1 %v2931_v37  ;;  %2584 = vmatprep.subr.mxu0 %v2752_v4 }
 0x384   :  { %2577 = vmatprep.subr.mxu1 %v2752_v4  ;;  %2585 = vmatpush3.msra.mxu0 %v2999_v50 }
 0x385   :  { %2578 = vmatpush3.msra.mxu1 %v2944_v40  ;;  %2586 = vmatprep.subr.mxu0 %v2752_v4 }
 0x386   :  { %2580 = vmatmul.mubr.msk.f32.vlgmr.msra.gmra.mxu1 %vm271_vm4, %v1102_v1  ;;  %2593 = vmatprep.subr.mxu1 %v2752_v4 }
 0x387   :  { %2587 = vmatpush3.msra.mxu0 %v3005_v51  ;;  %2594 = vmatpush3.msk.msra.mxu1 %vm275_vm3, %v3018_v54 }
 0x388   :  { %2588 = vmatprep.subr.mxu0 %v2752_v4  ;;  %2595 = vmatprep.subr.mxu1 %v2752_v4 }
 0x389   :  { %2589 = vmatpush3.msra.mxu0 %v3011_v52  ;;  %2596 = vmatpush3.msra.mxu1 %v3026_v55 }
 0x38a   :  { %2590 = vmatprep.mubr.msk.f32.mxu0 %vm2753_vm5, %v2752_v4  ;;  %2597 = vmatprep.subr.mxu1 %v2752_v4 }
 0x38b   :  { %2604 = vmatprep.subr.mxu0 %v2752_v4  ;;  %2598 = vmatpush3.msra.mxu1 %v3036_v56 }
 0x38c   :  { %2599 = vmatprep.subr.mxu1 %v2752_v4  ;;  %2601 = vmatprep.mubr.msk.f32.mxu1 %vm2753_vm5, %v2752_v4 }
 0x38d   :  { %2600 = vmatpush3.msra.mxu1 %v3043_v57 }
 0x38e   :  { %2615 = vmatprep.subr.mxu1 %v2752_v4 }
 0x43e   :  { %v1097_v5 = vpop.f32.mrf.mxu1 }
 0x440   :  { %v2559_v6 = vpop.f32.mrf.mxu1 }
 0x441   :  { %v1171_v7 = vpop.f32.mrf.mxu0 }
 0x442   :  { %v1172_v8 = vadd.f32 %v1171_v7, %v1097_v5 }
 0x443   :  { %v2570_v9 = vpop.f32.mrf.mxu0 }
 0x444   :  { %v1175_v11 = vadd.f32 %v3084_v14, %v1172_v8 }
 0x446   :  { %2730 = vtanh.f32 %v1175_v11  ;;  %v1243_v12 = vpop.f32.mrf.mxu1 }
 0x447   :  { %v1247_v13 = vadd.f32 %v1243_v12, %v3055_v10  ;;  %v2251_v12 = vld [vmem:[%s3368_s8] ss:$0 sm:$0xff] }
 0x448   :  { %v2581_v15 = vpop.f32.mrf.mxu1 }
 0x449   :  { %2732 = vtanh.f32 %v1247_v13 }
 0x453   :  { %v2731_v16 = vpop.eup %2730 }
 0x454   :  { %2591 = vmatmul.mubr.msk.f32.vlgmr.msra.gmra.mxu0 %vm271_vm4, %v2731_v16  ;;  %v2077_v17 = vrot.slane %v2731_v16, 2 }
 0x455   :  { %2605 = vmatpush3.msk.msra.mxu0 %vm275_vm3, %v2905_v31  ;;  %2612 = vmatprep.mubr.msk.f32.mxu0 %vm2753_vm5, %v2752_v4 }
 0x456   :  { %v2733_v18 = vpop.eup %2732  ;;  %2606 = vmatprep.subr.mxu0 %v2752_v4  ;;  %v3215_v19 = vsel %vm2089_vm7, %v2088_v3, %v2077_v17 }
 0x457   :  { %2607 = vmatpush3.msra.mxu0 %v2917_v34  ;;  %2602 = vmatmul.mubr.msk.f32.vlgmr.msra.gmra.mxu1 %vm271_vm4, %v2733_v18 }
 0x458   :  { %2608 = vmatprep.subr.mxu0 %v2752_v4  ;;  %2616 = vmatpush3.msk.msra.mxu1 %vm275_vm3, %v2991_v49 }
 0x459   :  { %2609 = vmatpush3.msra.mxu0 %v2931_v37  ;;  %2617 = vmatprep.subr.mxu1 %v2752_v4 }
 0x45a   :  { %2610 = vmatprep.subr.mxu0 %v2752_v4  ;;  %2618 = vmatpush3.msra.mxu1 %v2999_v50 }
 0x45b   :  { %2611 = vmatpush3.msra.mxu0 %v2944_v40  ;;  %2619 = vmatprep.subr.mxu1 %v2752_v4 }
 0x45c   :  { %2613 = vmatmul.mubr.msk.f32.vlgmr.msra.gmra.mxu0 %vm271_vm4, %v2733_v18  ;;  %2620 = vmatpush3.msra.mxu1 %v3005_v51 }
 0x45d   :  { %2621 = vmatprep.subr.mxu1 %v2752_v4  ;;  %2626 = vmatprep.subr.mxu0 %v2752_v4 }
 0x45e   :  { %2622 = vmatpush3.msra.mxu1 %v3011_v52  ;;  %2623 = vmatprep.mubr.msk.f32.mxu1 %vm2753_vm5, %v2752_v4 }
 0x45f   :  { %2627 = vmatpush3.msk.msra.mxu0 %vm275_vm3, %v3018_v54  ;;  %2637 = vmatprep.subr.mxu1 %v2752_v4 }
 0x460   :  { %2628 = vmatprep.subr.mxu0 %v2752_v4  ;;  %2634 = vmatprep.mubr.msk.f32.mxu0 %vm2753_vm5, %v2752_v4 }
 0x461   :  { %2629 = vmatpush3.msra.mxu0 %v3026_v55 }
 0x462   :  { %2630 = vmatprep.subr.mxu0 %v2752_v4 }
 0x463   :  { %2631 = vmatpush3.msra.mxu0 %v3036_v56 }
 0x464   :  { %2632 = vmatprep.subr.mxu0 %v2752_v4 }
 0x465   :  { %2633 = vmatpush3.msra.mxu0 %v3043_v57 }
 0x466   :  { %2648 = vmatprep.subr.mxu0 %v2752_v4 }
 0x514   :  { %v1318_v20 = vpop.f32.mrf.mxu0 }
 0x516   :  { %v2592_v21 = vpop.f32.mrf.mxu0 }
 0x517   :  { %v1391_v22 = vpop.f32.mrf.mxu1 }
 0x518   :  { %v1392_v23 = vadd.f32 %v1391_v22, %v1318_v20 }
 0x519   :  { %v2603_v24 = vpop.f32.mrf.mxu1 }
 0x51a   :  { %v1395_v25 = vadd.f32 %v3084_v14, %v1392_v23 }
 0x51c   :  { %2734 = vtanh.f32 %v1395_v25  ;;  %v1463_v26 = vpop.f32.mrf.mxu0 }
 0x51d   :  { %v1468_v27 = vrot.slane %v1463_v26, 6 }
 0x51e   :  { %v2614_v28 = vpop.f32.mrf.mxu0 }
 0x51f   :  { %v1470_v29 = vadd.f32 %v1468_v27, %v3055_v10 }
 0x521   :  { %2736 = vtanh.f32 %v1470_v29 }
 0x529   :  { %v3249_v30 = vpop.eup %2734 }
 0x52a   :  { %2624 = vmatmul.mubr.msk.f32.vlgmr.msra.gmra.mxu1 %vm271_vm4, %v3249_v30 }
 0x52b   :  { %2638 = vmatpush3.msk.msra.mxu1 %vm275_vm3, %v2905_v31  ;;  %2645 = vmatprep.mubr.msk.f32.mxu1 %vm2753_vm5, %v2752_v4 }
 0x52c   :  { %2639 = vmatprep.subr.mxu1 %v2752_v4 }
 0x52d   :  { %2640 = vmatpush3.msra.mxu1 %v2917_v34 }
 0x52e   :  { %v2737_v32 = vpop.eup %2736  ;;  %2641 = vmatprep.subr.mxu1 %v2752_v4 }
 0x52f   :  { %v1546_v33 = vrot.slane %v2737_v32, 2  ;;  %2642 = vmatpush3.msra.mxu1 %v2931_v37 }
 0x530   :  { %2643 = vmatprep.subr.mxu1 %v2752_v4 }
 0x531   :  { %2635 = vmatmul.mubr.msk.f32.vlgmr.msra.gmra.mxu0 %vm271_vm4, %v1546_v33  ;;  %2644 = vmatpush3.msra.mxu1 %v2944_v40 }
 0x532   :  { %2646 = vmatmul.mubr.msk.f32.vlgmr.msra.gmra.mxu1 %vm271_vm4, %v1546_v33  ;;  %2649 = vmatpush3.msk.msra.mxu0 %vm275_vm3, %v2991_v49 }
 0x533   :  { %2650 = vmatprep.subr.mxu0 %v2752_v4  ;;  %2659 = vmatprep.subr.mxu1 %v2752_v4 }
 0x534   :  { %2651 = vmatpush3.msra.mxu0 %v2999_v50  ;;  %2660 = vmatpush3.msk.msra.mxu1 %vm275_vm3, %v3018_v54 }
 0x535   :  { %2652 = vmatprep.subr.mxu0 %v2752_v4  ;;  %2661 = vmatprep.subr.mxu1 %v2752_v4 }
 0x536   :  { %2653 = vmatpush3.msra.mxu0 %v3005_v51  ;;  %2662 = vmatpush3.msra.mxu1 %v3026_v55 }
 0x537   :  { %2654 = vmatprep.subr.mxu0 %v2752_v4  ;;  %2656 = vmatprep.mubr.msk.f32.mxu0 %vm2753_vm5, %v2752_v4 }
 0x538   :  { %2655 = vmatpush3.msra.mxu0 %v3011_v52  ;;  %2663 = vmatprep.subr.mxu1 %v2752_v4 }
 0x539   :  { %2670 = vmatprep.subr.mxu0 %v2752_v4  ;;  %2664 = vmatpush3.msra.mxu1 %v3036_v56 }
 0x53a   :  { %2665 = vmatprep.subr.mxu1 %v2752_v4  ;;  %2667 = vmatprep.mubr.msk.f32.mxu1 %vm2753_vm5, %v2752_v4 }
 0x53b   :  { %2666 = vmatpush3.msra.mxu1 %v3043_v57 }
 0x53c   :  { %2681 = vmatprep.subr.mxu1 %v2752_v4 }
 0x5ea   :  { %v1541_v35 = vpop.f32.mrf.mxu1 }
 0x5ec   :  { %v2625_v36 = vpop.f32.mrf.mxu1 }
 0x5f1   :  { %v1615_v38 = vpop.f32.mrf.mxu0 }
 0x5f2   :  { %v1616_v39 = vadd.f32 %v1615_v38, %v1541_v35  ;;  %v1687_v41 = vpop.f32.mrf.mxu1 }
 0x5f3   :  { %v1692_v42 = vrot.slane %v1687_v41, 4  ;;  %v2636_v43 = vpop.f32.mrf.mxu0 }
 0x5f4   :  { %v1619_v44 = vadd.f32 %v3084_v14, %v1616_v39  ;;  %v2647_v45 = vpop.f32.mrf.mxu1 }
 0x5f5   :  { %v1694_v46 = vadd.f32 %v1692_v42, %v3055_v10 }
 0x5f6   :  { %2738 = vtanh.f32 %v1619_v44 }
 0x5f7   :  { %2740 = vtanh.f32 %v1694_v46 }
 0x603   :  { %v2739_v47 = vpop.eup %2738 }
 0x604   :  { %v2741_v48 = vpop.eup %2740  ;;  %2657 = vmatmul.mubr.msk.f32.vlgmr.msra.gmra.mxu0 %vm271_vm4, %v2739_v47  ;;  %v2079_v58 = vrot.slane %v2739_v47, 6 }
 0x605   :  { %v1770_v53 = vrot.slane %v2741_v48, 4  ;;  %2671 = vmatpush3.msk.msra.mxu0 %vm275_vm3, %v2905_v31  ;;  %2678 = vmatprep.mubr.msk.f32.mxu0 %vm2753_vm5, %v2752_v4 }
 0x606   :  { %2672 = vmatprep.subr.mxu0 %v2752_v4 }
 0x607   :  { %2673 = vmatpush3.msra.mxu0 %v2917_v34  ;;  %2668 = vmatmul.mubr.msk.f32.vlgmr.msra.gmra.mxu1 %vm271_vm4, %v1770_v53 }
 0x608   :  { %2674 = vmatprep.subr.mxu0 %v2752_v4  ;;  %2682 = vmatpush3.msk.msra.mxu1 %vm275_vm3, %v2991_v49 }
 0x609   :  { %2675 = vmatpush3.msra.mxu0 %v2931_v37  ;;  %2683 = vmatprep.subr.mxu1 %v2752_v4 }
 0x60a   :  { %2676 = vmatprep.subr.mxu0 %v2752_v4  ;;  %2684 = vmatpush3.msra.mxu1 %v2999_v50 }
 0x60b   :  { %2677 = vmatpush3.msra.mxu0 %v2944_v40  ;;  %2685 = vmatprep.subr.mxu1 %v2752_v4 }
 0x60c   :  { %2679 = vmatmul.mubr.msk.f32.vlgmr.msra.gmra.mxu0 %vm271_vm4, %v1770_v53  ;;  %2686 = vmatpush3.msra.mxu1 %v3005_v51 }
 0x60d   :  { %2687 = vmatprep.subr.mxu1 %v2752_v4  ;;  %2692 = vmatprep.subr.mxu0 %v2752_v4 }
 0x60e   :  { %2688 = vmatpush3.msra.mxu1 %v3011_v52  ;;  %2689 = vmatprep.mubr.msk.f32.mxu1 %vm2753_vm5, %v2752_v4 }
 0x60f   :  { %2693 = vmatpush3.msk.msra.mxu0 %vm275_vm3, %v3018_v54  ;;  %2700 = vmatprep.mubr.msk.f32.mxu0 %vm2753_vm5, %v2752_v4 }
 0x610   :  { %2694 = vmatprep.subr.mxu0 %v2752_v4 }
 0x611   :  { %2695 = vmatpush3.msra.mxu0 %v3026_v55 }
 0x612   :  { %2696 = vmatprep.subr.mxu0 %v2752_v4 }
 0x613   :  { %2697 = vmatpush3.msra.mxu0 %v3036_v56 }
 0x614   :  { %2698 = vmatprep.subr.mxu0 %v2752_v4 }
 0x615   :  { %2699 = vmatpush3.msra.mxu0 %v3043_v57  ;;  %v2091_v57 = vsel %vm96_vm1, %v3249_v30, %v2079_v58 }
 0x6c4   :  { %v1765_v31 = vpop.f32.mrf.mxu0 }
 0x6c6   :  { %v2658_v34 = vpop.f32.mrf.mxu0 }
 0x6c7   :  { %v1839_v37 = vpop.f32.mrf.mxu1 }
 0x6c8   :  { %v1840_v40 = vadd.f32 %v1839_v37, %v1765_v31 }
 0x6c9   :  { %v2669_v49 = vpop.f32.mrf.mxu1 }
 0x6ca   :  { %v1843_v50 = vadd.f32 %v3084_v14, %v1840_v40 }
 0x6cc   :  { %2742 = vtanh.f32 %v1843_v50  ;;  %v1911_v51 = vpop.f32.mrf.mxu0 }
 0x6cd   :  { %v1916_v52 = vrot.slane %v1911_v51, 2 }
 0x6ce   :  { %v2680_v54 = vpop.f32.mrf.mxu0 }
 0x6cf   :  { %v1918_v55 = vadd.f32 %v1916_v52, %v3055_v10  ;;  %v2097_v10 = vld [vmem:[%s3367_s7 + $0x18] sm:$0x1f] }
 0x6d0   :  { %2703 = vmatprep.subr.msk.mxu1 %vm275_vm3, %v2097_v10 }
 0x6d1   :  { %2744 = vtanh.f32 %v1918_v55 }
 0x6d9   :  { %v2743_v56 = vpop.eup %2742 }
 0x6da   :  { %2690 = vmatmul.mubr.msk.f32.vlgmr.msra.gmra.mxu1 %vm271_vm4, %v2743_v56  ;;  %v2081_v4 = vrot.slane %v2743_v56, 4 }
 0x6db   :  { %2711 = vmatprep.mubr.msk.f32.mxu1 %vm271_vm4, %v3215_v19  ;;  %2704 = vmatpush3.msk.msra.mxu1 %vm275_vm3, %v2097_v10 }
 0x6dc   :  { %v2092_v59 = vsel %vm2087_vm6, %v2091_v57, %v2081_v4  ;;  %2705 = vmatprep.subr.mxu1 %v2096_v62 }
 0x6dd   :  { %2706 = vmatpush3.msra.mxu1 %v2096_v62 }
 0x6de   :  { %v2745_v60 = vpop.eup %2744  ;;  %2707 = vmatprep.subr.mxu1 %v2095_v63 }
 0x6df   :  { %2070 = vst.msk [vmem:[#allocation2 - $0x6] sm:$0xc0] %vm2069_vm8, %v2745_v60  ;;  %v1994_v61 = vrot.slane %v2745_v60, 6  ;;  %2708 = vmatpush3.msra.mxu1 %v2095_v63 }
 0x6e0   :  { %2709 = vmatprep.subr.mxu1 %v2094_v0 }
 0x6e1   :  { %2701 = vmatmul.mubr.msk.f32.vlgmr.msra.gmra.mxu0 %vm271_vm4, %v1994_v61  ;;  %2710 = vmatpush3.msra.mxu1 %v2094_v0 }
 0x79a   :  { %v1989_v1 = vpop.f32.mrf.mxu1 }
 0x79c   :  { %v2691_v2 = vpop.f32.mrf.mxu1 }
 0x7a1   :  { %v2063_v3 = vpop.f32.mrf.mxu0 }
 0x7a2   :  { %v2064_v5 = vadd.f32 %v2063_v3, %v1989_v1 }
 0x7a3   :  { %v2702_v6 = vpop.f32.mrf.mxu0 }
 0x7a4   :  { %v2067_v7 = vadd.f32 %v3084_v14, %v2064_v5 }
 0x7a6   :  { %2746 = vtanh.f32 %v2067_v7 }
 0x7b3   :  { %v2747_v8 = vpop.eup %2746 }
 0x7b4   :  { %2072 = vst.msk [vmem:[#allocation3] sm:$0x3] %vm36_vm0, %v2747_v8  ;;  %v2084_v9 = vrot.slane %v2747_v8, 2 }
 0x7b6   :  { %v2093_v11 = vsel %vm2089_vm7, %v2092_v59, %v2084_v9 }
 0x7b7   :  { %2712 = vmatmul.mubr.msk.f32.vlgmr.msra.gmra.mxu1 %vm271_vm4, %v2093_v11 }
 0x877   :  { %v2713_v13 = vpop.f32.mrf.mxu1 }
 0x878   :  { %v2186_v15 = vadd.f32 %v2713_v13, %v2251_v12 }
 0x879   :  { %v2180_v16 = vpop.f32.mrf.mxu1 }
 0x87a   :  { %2748 = vtanh.f32 %v2186_v15  ;;  %v2181_v17 = vadd.f32 %v2251_v12, %v2180_v16 }
 0x87c   :  { %2750 = vtanh.f32 %v2181_v17 }
 0x887   :  { %v2749_v14 = vpop.eup %2748 }
 0x888   :  { %2193 = vst.msk [vmem:[%s3369_s9 + $0x8] sm:$0xff] %vm2191_vm9, %v2749_v14 }
 0x889   :  { %v2751_v18 = vpop.eup %2750 }
 0x88a   :  { %2192 = vst.msk [vmem:[%s3369_s9] sm:$0xff] %vm2191_vm9, %v2751_v18 }

</bundles_post_ra>
